<compile_context>
chip_gen: v7x
topology: tpu7x:2x2x1
jax: 0.10.0
libtpu: 0.0.40
codegen_flags: <defaults>
</compile_context>

<pallas_src>
import math

import jax
import jax.numpy as jnp
from jax.experimental import pallas as pl
from jax.experimental.pallas import tpu as pltpu


def _round_up(x, m):
    return ((x + m - 1) // m) * m


def _mlp_kernel(x_ref, w1_ref, b1_ref, w2_ref, b2_ref, o_ref):
    # Layer 1: h = relu(x @ W1 + b1)   (TM, H)  -- MXU (f32 acc) + VPU
    h = jnp.dot(x_ref[...], w1_ref[...], preferred_element_type=jnp.float32)
    h = jnp.maximum(h + b1_ref[...], 0.0)
    # Cast h to the weight dtype for the second MXU op (no-op on the f32
    # path, bf16 on the reduced-traffic path); accumulation stays f32.
    h = h.astype(w2_ref.dtype)
    # Layer 2: o = h @ W2 + b2         (TM, C)  -- MXU (f32 acc)
    o = jnp.dot(h, w2_ref[...], preferred_element_type=jnp.float32)
    o_ref[...] = (o + b2_ref[...]).astype(o_ref.dtype)


def classifier_forward(x, w1, b1, w2, b2, *, tm=None, mxu_bf16=False):
    """Fused MLP head: relu(x @ W1 + b1) @ W2 + b2 in one pallas_call.

    x : (N, F_in) f32
    w1: (F_in, H) f32,  b1: (H,) f32
    w2: (H, C)    f32,  b2: (C,) f32
    Returns (N, C) f32.
    """
    n, f_in = x.shape
    hid = w1.shape[1]
    c = w2.shape[1]

    # Row-tile selection:
    #  - small N  -> one block covering all rows (no pipeline / step overhead)
    #  - large N  -> 1024-row tiles (near HBM roofline; tiny VMEM footprint
    #                even on v7x's 64 MiB VMEM, so default scoped limit is fine)
    if tm is None:
        tm = n if n <= 1024 else 1024
    tm = min(tm, n)
    if tm != n:
        # Sublane / bf16-packing alignment for tiled (partial-last) blocks.
        tm = _round_up(tm, 16)
    grid = (pl.cdiv(n, tm),)

    # Optional bf16 MXU inputs: halves the dominant x HBM read traffic.
    in_dtype = jnp.bfloat16 if mxu_bf16 else jnp.float32
    x_in = x.astype(in_dtype)
    w1_in = w1.astype(in_dtype)
    w2_in = w2.astype(in_dtype)
    b1_in = b1.reshape(1, hid).astype(jnp.float32)
    b2_in = b2.reshape(1, c).astype(jnp.float32)

    return pl.pallas_call(
        _mlp_kernel,
        out_shape=jax.ShapeDtypeStruct((n, c), jnp.float32),
        grid_spec=pltpu.PrefetchScalarGridSpec(
            num_scalar_prefetch=0,
            grid=grid,
            in_specs=[
                pl.BlockSpec((tm, f_in), lambda i: (i, 0)),    # x row tile (unpadded)
                pl.BlockSpec((f_in, hid), lambda i: (0, 0)),   # W1 (VMEM-resident)
                pl.BlockSpec((1, hid), lambda i: (0, 0)),      # b1 (resident)
                pl.BlockSpec((hid, c), lambda i: (0, 0)),      # W2 (resident)
                pl.BlockSpec((1, c), lambda i: (0, 0)),        # b2 (resident)
            ],
            # Lane-narrow (c=2) but UNPADDED output: masked stores cost far
            # less than the 64x write amplification of padding to 128 lanes.
            out_specs=pl.BlockSpec((tm, c), lambda i: (i, 0)),
        ),
        compiler_params=pltpu.CompilerParams(
            # Lets v7x shard row tiles across its 2 TensorCores; harmless
            # no-op on single-TC v5e/v6e.
            dimension_semantics=("parallel",),
        ),
    )(x_in, w1_in, b1_in, w2_in, b2_in)


if __name__ == "__main__":
    # Shapes implied by Classifier.__init__:
    #   num_feats = gcn_parameters['layer_2_feats'] * 2
    #   hidden    = gcn_parameters['cls_feats']
    #   out_features = 2
    layer_2_feats = 32
    num_feats = layer_2_feats * 2      # 64
    cls_feats = 96                     # hidden width
    out_features = 2
    n = 300                            # small demo N -> single-block path

    key = jax.random.PRNGKey(0)
    kx, kw1, kb1, kw2, kb2, kx2 = jax.random.split(key, 6)

    # torch.nn.Linear default init: U(-1/sqrt(fan_in), 1/sqrt(fan_in)).
    s1 = 1.0 / math.sqrt(num_feats)
    s2 = 1.0 / math.sqrt(cls_feats)
    x = jax.random.normal(kx, (n, num_feats), jnp.float32)
    w1 = jax.random.uniform(kw1, (num_feats, cls_feats), jnp.float32, minval=-s1, maxval=s1)
    b1 = jax.random.uniform(kb1, (cls_feats,), jnp.float32, minval=-s1, maxval=s1)
    w2 = jax.random.uniform(kw2, (cls_feats, out_features), jnp.float32, minval=-s2, maxval=s2)
    b2 = jax.random.uniform(kb2, (out_features,), jnp.float32, minval=-s2, maxval=s2)

    def ref_fwd(xx):
        return jnp.maximum(xx @ w1 + b1, 0.0) @ w2 + b2

    # 1) Small-N path: single grid step, f32 MXU inputs (matches PyTorch numerics).
    out = classifier_forward(x, w1, b1, w2, b2)
    jax.block_until_ready(out)
    ref = ref_fwd(x)
    assert out.shape == (n, out_features)
    assert jnp.allclose(out, ref, atol=1e-4, rtol=1e-4), float(jnp.max(jnp.abs(out - ref)))

    # 2) Large-N path: multi-step grid with a ragged last row tile (masked edge).
    n_big = 2600
    x_big = jax.random.normal(kx2, (n_big, num_feats), jnp.float32)
    out_big = classifier_forward(x_big, w1, b1, w2, b2, tm=1024)
    jax.block_until_ready(out_big)
    ref_big = ref_fwd(x_big)
    assert out_big.shape == (n_big, out_features)
    assert jnp.allclose(out_big, ref_big, atol=1e-4, rtol=1e-4), float(
        jnp.max(jnp.abs(out_big - ref_big)))

    # 3) Optional bf16 MXU-input path (halves x HBM read; looser tolerance vs f32 ref).
    out_bf16 = classifier_forward(x_big, w1, b1, w2, b2, mxu_bf16=True)
    jax.block_until_ready(out_bf16)
    assert jnp.allclose(out_bf16, ref_big, atol=5e-2, rtol=5e-2), float(
        jnp.max(jnp.abs(out_bf16 - ref_big)))

    print("KERNEL_OK")
</pallas_src>

<mosaic_0001>
module attributes {stable_mosaic.version = 11 : i64} {
  func.func @_mlp_kernel(%arg0: i32, %arg1: memref<300x64xf32, #tpu.memory_space<vmem>>, %arg2: memref<64x96xf32, #tpu.memory_space<vmem>>, %arg3: memref<1x96xf32, #tpu.memory_space<vmem>>, %arg4: memref<96x2xf32, #tpu.memory_space<vmem>>, %arg5: memref<1x2xf32, #tpu.memory_space<vmem>>, %arg6: memref<300x2xf32, #tpu.memory_space<vmem>>) attributes {dimension_semantics = [#tpu.dimension_semantics<parallel>], iteration_bounds = array<i64: 1>, scalar_prefetch = 0 : i64, scratch_operands = 0 : i64, tpu.core_type = #tpu.core_type<tc>, window_params = [{transform_indices = @transform_0, window_bounds = array<i64: 300, 64>}, {pipeline_mode = #tpu.pipeline_mode<synchronous>, transform_indices = @transform_1, window_bounds = array<i64: 64, 96>}, {pipeline_mode = #tpu.pipeline_mode<synchronous>, transform_indices = @transform_2, window_bounds = array<i64: 1, 96>}, {pipeline_mode = #tpu.pipeline_mode<synchronous>, transform_indices = @transform_3, window_bounds = array<i64: 96, 2>}, {pipeline_mode = #tpu.pipeline_mode<synchronous>, transform_indices = @transform_4, window_bounds = array<i64: 1, 2>}, {transform_indices = @transform_5, window_bounds = array<i64: 300, 2>}]} {
    %c0 = arith.constant 0 : index
    %c0_0 = arith.constant 0 : index
    %0 = vector.load %arg1[%c0, %c0_0] : memref<300x64xf32, #tpu.memory_space<vmem>>, vector<300x64xf32>
    %c0_1 = arith.constant 0 : index
    %c0_2 = arith.constant 0 : index
    %1 = vector.load %arg2[%c0_1, %c0_2] : memref<64x96xf32, #tpu.memory_space<vmem>>, vector<64x96xf32>
    %cst = arith.constant dense<0.000000e+00> : vector<300x96xf32>
    %2 = tpu.matmul %0, %1, %cst {dimension_numbers = #tpu.dot_dimension_numbers<[1], [0], [0], [1], [0, 0, 1, 1], [], []>} : vector<300x64xf32>, vector<64x96xf32>, vector<300x96xf32> -> vector<300x96xf32>
    %c0_3 = arith.constant 0 : index
    %c0_4 = arith.constant 0 : index
    %3 = vector.load %arg3[%c0_3, %c0_4] : memref<1x96xf32, #tpu.memory_space<vmem>>, vector<1x96xf32>
    %4 = vector.broadcast %3 : vector<1x96xf32> to vector<300x96xf32>
    %5 = arith.addf %2, %4 : vector<300x96xf32>
    %cst_5 = arith.constant 0.000000e+00 : f32
    %6 = vector.broadcast %cst_5 : f32 to vector<300x96xf32>
    %7 = arith.maximumf %5, %6 : vector<300x96xf32>
    %c0_6 = arith.constant 0 : index
    %c0_7 = arith.constant 0 : index
    %8 = vector.load %arg4[%c0_6, %c0_7] : memref<96x2xf32, #tpu.memory_space<vmem>>, vector<96x2xf32>
    %cst_8 = arith.constant dense<0.000000e+00> : vector<300x2xf32>
    %9 = tpu.matmul %7, %8, %cst_8 {dimension_numbers = #tpu.dot_dimension_numbers<[1], [0], [0], [1], [0, 0, 1, 1], [], []>} : vector<300x96xf32>, vector<96x2xf32>, vector<300x2xf32> -> vector<300x2xf32>
    %c0_9 = arith.constant 0 : index
    %c0_10 = arith.constant 0 : index
    %10 = vector.load %arg5[%c0_9, %c0_10] : memref<1x2xf32, #tpu.memory_space<vmem>>, vector<1x2xf32>
    %11 = vector.broadcast %10 : vector<1x2xf32> to vector<300x2xf32>
    %12 = arith.addf %9, %11 : vector<300x2xf32>
    %c0_11 = arith.constant 0 : index
    %c0_12 = arith.constant 0 : index
    %13 = vector.load %arg6[%c0_11, %c0_12] : memref<300x2xf32, #tpu.memory_space<vmem>>, vector<300x2xf32>
    tpu.vector_store %arg6[%c0_11, %c0_12], %12 {strides = array<i32>} : memref<300x2xf32, #tpu.memory_space<vmem>>, vector<300x2xf32>,
    return
  }
  func.func @transform_0(%arg0: i32) -> (i32, i32) {
    %c0_i32 = arith.constant 0 : i32
    %c0_i32_0 = arith.constant 0 : i32
    return %arg0, %c0_i32 : i32, i32
  }
  func.func @transform_1(%arg0: i32) -> (i32, i32) {
    %c0_i32 = arith.constant 0 : i32
    %c0_i32_0 = arith.constant 0 : i32
    %c0_i32_1 = arith.constant 0 : i32
    return %c0_i32, %c0_i32_0 : i32, i32
  }
  func.func @transform_2(%arg0: i32) -> (i32, i32) {
    %c0_i32 = arith.constant 0 : i32
    %c0_i32_0 = arith.constant 0 : i32
    %c0_i32_1 = arith.constant 0 : i32
    return %c0_i32, %c0_i32_0 : i32, i32
  }
  func.func @transform_3(%arg0: i32) -> (i32, i32) {
    %c0_i32 = arith.constant 0 : i32
    %c0_i32_0 = arith.constant 0 : i32
    %c0_i32_1 = arith.constant 0 : i32
    return %c0_i32, %c0_i32_0 : i32, i32
  }
  func.func @transform_4(%arg0: i32) -> (i32, i32) {
    %c0_i32 = arith.constant 0 : i32
    %c0_i32_0 = arith.constant 0 : i32
    %c0_i32_1 = arith.constant 0 : i32
    return %c0_i32, %c0_i32_0 : i32, i32
  }
  func.func @transform_5(%arg0: i32) -> (i32, i32) {
    %c0_i32 = arith.constant 0 : i32
    %c0_i32_0 = arith.constant 0 : i32
    return %arg0, %c0_i32 : i32, i32
  }
}

</mosaic_0001>

<bundles_post_ra>
// kernel: tpu_custom_call.1
= control target key start
LH: loop header
LB: loop body
LE: loop exit
PB: predicated region body
PF: predicated region fallthrough
CT: control target
= control target key end

     0   :  { %vm73_vm0 = vcmask 523264   ;;  %vm500_vm1 = vcmask 785408   ;;  %vm870_vm2 = vcmask 15360   ;;  %vm908_vm3 = vcmask 11264   ;;  %s1811_s1 = inlined_call_operand.vmem [shape: f32[64,96], index: 1, kind: input, shape index: {}]   ;;  %s1812_s0 = inlined_call_operand.vmem [shape: f32[300,64], index: 0, kind: input, shape index: {}]   ;;  %s1813_s3 = inlined_call_operand.vmem [shape: f32[96,2], index: 3, kind: input, shape index: {}]   ;;  %s1814_s2 = inlined_call_operand.vmem [shape: f32[1,96], index: 2, kind: input, shape index: {}]   ;;  %s1815_s4 = inlined_call_operand.vmem [shape: f32[1,2], index: 4, kind: input, shape index: {}]   ;;  %s1816_s5 = inlined_call_operand.vmem [shape: f32[300,2], index: 5, kind: output, shape index: {}]  }
   0x1   :  { %v58_v0 = vld [vmem:[%s1811_s1] sm:$0xff]  ;;  %v59_v1 = vld [vmem:[%s1811_s1 + $0x8] sm:$0xff]  ;;  %v60_v2 = vld [vmem:[%s1811_s1 + $0x10] sm:$0xff] }
   0x2   :  { %v1242_v3 = vpack.c.bf16 %v59_v1, %v58_v0  ;;  %v61_v4 = vld [vmem:[%s1811_s1 + $0x18] sm:$0xff]  ;;  %v62_v6 = vld [vmem:[%s1811_s1 + $0x20] sm:$0xff]  ;;  %v63_v7 = vld [vmem:[%s1811_s1 + $0x28] sm:$0xff] }
   0x3   :  { %v1246_v5 = vpack.c.bf16 %v61_v4, %v60_v2  ;;  %v20_v8 = vld [vmem:[%s1812_s0] sm:$0xff]  ;;  %v1250_v9 = vpack.c.bf16 %v63_v7, %v62_v6  ;;  %v64_v10 = vld [vmem:[%s1811_s1 + $0x30] sm:$0xff]  ;;  %v65_v11 = vld [vmem:[%s1811_s1 + $0x38] sm:$0xff] }
   0x4   :  { %1243 = vmatprep.subr.bf16.mxu0 %v1242_v3  ;;  %1104 = vmatprep.mubr.msk.f32.mxu0 %vm73_vm0, %v20_v8  ;;  %v1254_v12 = vpack.c.bf16 %v65_v11, %v64_v10  ;;  %v481_v13 = vld [vmem:[%s1813_s3] sm:$0xff]  ;;  %v482_v14 = vld [vmem:[%s1813_s3 + $0x8] sm:$0xff]  ;;  %v483_v17 = vld [vmem:[%s1813_s3 + $0x10] sm:$0xff] }
   0x5   :  { %1245 = vmatpush3.bf16.msra.mxu0 %v1242_v3  ;;  %v21_v15 = vld [vmem:[%s1812_s0 + $0x8] sm:$0xff]  ;;  %v1258_v16 = vpack.c.bf16 %v482_v14, %v481_v13  ;;  %v484_v18 = vld [vmem:[%s1813_s3 + $0x18] sm:$0xff]  ;;  %v22_v19 = vld [vmem:[%s1812_s0 + $0x10] sm:$0xff] }
   0x6   :  { %1247 = vmatprep.subr.bf16.mxu0 %v1246_v5  ;;  %v1262_v20 = vpack.c.bf16 %v484_v18, %v483_v17  ;;  %v485_v21 = vld [vmem:[%s1813_s3 + $0x20] sm:$0xff]  ;;  %v486_v22 = vld [vmem:[%s1813_s3 + $0x28] sm:$0xff]  ;;  %v23_v23 = vld [vmem:[%s1812_s0 + $0x18] sm:$0xff] }
   0x7   :  { %1282 = vmatprep.subr.bf16.mxu1 %v1258_v16  ;;  %v24_v24 = vld [vmem:[%s1812_s0 + $0x20] sm:$0xff]  ;;  %v1266_v25 = vpack.c.bf16 %v486_v22, %v485_v21  ;;  %v487_v26 = vld [vmem:[%s1813_s3 + $0x30] sm:$0xff]  ;;  %v488_v27 = vld [vmem:[%s1813_s3 + $0x38] sm:$0xff] }
   0x8   :  { %1288 = vmatpush3.bf16.msra.mxu1 %v1258_v16  ;;  %v25_v28 = vld [vmem:[%s1812_s0 + $0x28] sm:$0xff]  ;;  %v26_v29 = vld [vmem:[%s1812_s0 + $0x30] sm:$0xff]  ;;  %v1270_v30 = vpack.c.bf16 %v488_v27, %v487_v26  ;;  %v489_v31 = vld [vmem:[%s1813_s3 + $0x40] sm:$0xff] }
   0x9   :  { %1249 = vmatpush3.bf16.msra.mxu0 %v1246_v5  ;;  %1283 = vmatprep.subr.bf16.mxu1 %v1262_v20  ;;  %v490_v32 = vld [vmem:[%s1813_s3 + $0x48] sm:$0xff]  ;;  %v27_v33 = vld [vmem:[%s1812_s0 + $0x38] sm:$0xff]  ;;  %v28_v34 = vld [vmem:[%s1812_s0 + $0x40] sm:$0xff] }
   0xa   :  { %1251 = vmatprep.subr.bf16.mxu0 %v1250_v9  ;;  %v1274_v35 = vpack.c.bf16 %v490_v32, %v489_v31  ;;  %v29_v36 = vld [vmem:[%s1812_s0 + $0x48] sm:$0xff]  ;;  %v30_v37 = vld [vmem:[%s1812_s0 + $0x50] sm:$0xff]  ;;  %v31_v38 = vld [vmem:[%s1812_s0 + $0x58] sm:$0xff] }
   0xb   :  { %v32_v39 = vld [vmem:[%s1812_s0 + $0x60] sm:$0xff]  ;;  %v33_v40 = vld [vmem:[%s1812_s0 + $0x68] sm:$0xff]  ;;  %v34_v41 = vld [vmem:[%s1812_s0 + $0x70] sm:$0xff] }
   0xc   :  { %1289 = vmatpush3.bf16.msra.mxu1 %v1262_v20  ;;  %v35_v42 = vld [vmem:[%s1812_s0 + $0x78] sm:$0xff]  ;;  %v36_v43 = vld [vmem:[%s1812_s0 + $0x80] sm:$0xff]  ;;  %v37_v44 = vld [vmem:[%s1812_s0 + $0x88] sm:$0xff] }
   0xd   :  { %1253 = vmatpush3.bf16.msra.mxu0 %v1250_v9  ;;  %1284 = vmatprep.subr.bf16.mxu1 %v1266_v25  ;;  %v38_v45 = vld [vmem:[%s1812_s0 + $0x90] sm:$0xff]  ;;  %v39_v46 = vld [vmem:[%s1812_s0 + $0x98] sm:$0xff]  ;;  %v40_v47 = vld [vmem:[%s1812_s0 + $0xa0] sm:$0xff] }
   0xe   :  { %1255 = vmatprep.subr.bf16.mxu0 %v1254_v12  ;;  %v41_v48 = vld [vmem:[%s1812_s0 + $0xa8] sm:$0xff]  ;;  %v42_v49 = vld [vmem:[%s1812_s0 + $0xb0] sm:$0xff]  ;;  %v43_v50 = vld [vmem:[%s1812_s0 + $0xb8] sm:$0xff] }
   0xf   :  { %v44_v51 = vld [vmem:[%s1812_s0 + $0xc0] sm:$0xff]  ;;  %v45_v52 = vld [vmem:[%s1812_s0 + $0xc8] sm:$0xff]  ;;  %v46_v53 = vld [vmem:[%s1812_s0 + $0xd0] sm:$0xff] }
  0x10   :  { %1290 = vmatpush3.bf16.msra.mxu1 %v1266_v25  ;;  %v47_v54 = vld [vmem:[%s1812_s0 + $0xd8] sm:$0xff]  ;;  %v48_v55 = vld [vmem:[%s1812_s0 + $0xe0] sm:$0xff]  ;;  %v49_v56 = vld [vmem:[%s1812_s0 + $0xe8] sm:$0xff] }
  0x11   :  { %1257 = vmatpush3.bf16.msra.mxu0 %v1254_v12  ;;  %1285 = vmatprep.subr.bf16.mxu1 %v1270_v30  ;;  %v50_v57 = vld [vmem:[%s1812_s0 + $0xf0] sm:$0xff]  ;;  %v51_v58 = vld [vmem:[%s1812_s0 + $0xf8] sm:$0xff]  ;;  %v52_v59 = vld [vmem:[%s1812_s0 + $0x100] sm:$0xff] }
  0x12   :  { %1259 = vmatprep.subr.bf16.mxu0 %v1258_v16  ;;  %v53_v60 = vld [vmem:[%s1812_s0 + $0x108] sm:$0xff]  ;;  %v54_v61 = vld [vmem:[%s1812_s0 + $0x110] sm:$0xff]  ;;  %v55_v62 = vld [vmem:[%s1812_s0 + $0x118] sm:$0xff] }
  0x13   :  { %v56_v63 = vld [vmem:[%s1812_s0 + $0x120] sm:$0xff]  ;;  %v57_v0 = vld [vmem:[%s1812_s0 + $0x128] sm:$0xf]  ;;  %v491_v1 = vld [vmem:[%s1813_s3 + $0x50] sm:$0xff] }
  0x14   :  { %1105 = vmatmul.mubr.msk.f32.vlgmr.msra.gmra.mrb[0].mxu0 %vm73_vm0, %v21_v15  ;;  %1291 = vmatpush3.bf16.msra.mxu1 %v1270_v30  ;;  %v492_v2 = vld [vmem:[%s1813_s3 + $0x58] sm:$0xff]  ;;  %v1539_v4 = vld [vmem:[%s1814_s2] ss:$0 sm:$0xff] }
  0x15   :  { %1107 = vmatprep.mubr.msk.f32.mxu0 %vm73_vm0, %v22_v19  ;;  %1261 = vmatpush3.bf16.msra.mxu0 %v1258_v16  ;;  %v1278_v3 = vpack.c.bf16 %v492_v2, %v491_v1 }
  0x16   :  { %1263 = vmatprep.subr.bf16.mxu0 %v1262_v20  ;;  %1286 = vmatprep.subr.bf16.mxu1 %v1274_v35 }
  0x18   :  { %1108 = vmatmul.mubr.msk.f32.gmra.mrb[2].mxu0 %vm73_vm0, %v23_v23  ;;  %1292 = vmatpush3.bf16.msra.mxu1 %v1274_v35 }
  0x19   :  { %1110 = vmatprep.mubr.msk.f32.mxu0 %vm73_vm0, %v24_v24  ;;  %1265 = vmatpush3.bf16.msra.mxu0 %v1262_v20 }
  0x1a   :  { %1267 = vmatprep.subr.bf16.mxu0 %v1266_v25  ;;  %1287 = vmatprep.subr.bf16.mxu1 %v1278_v3 }
  0x1c   :  { %1111 = vmatmul.mubr.msk.f32.gmra.mrb[4].mxu0 %vm73_vm0, %v25_v28  ;;  %1293 = vmatpush3.bf16.msra.mxu1 %v1278_v3 }
  0x1d   :  { %1113 = vmatprep.mubr.msk.f32.mxu0 %vm73_vm0, %v26_v29  ;;  %1269 = vmatpush3.bf16.msra.mxu0 %v1266_v25 }
  0x1e   :  { %1271 = vmatprep.subr.bf16.mxu0 %v1270_v30 }
  0x20   :  { %1114 = vmatmul.mubr.msk.f32.gmra.mrb[6].mxu0 %vm73_vm0, %v27_v33 }
  0x21   :  { %1116 = vmatprep.mubr.msk.f32.mxu0 %vm73_vm0, %v28_v34  ;;  %1273 = vmatpush3.bf16.msra.mxu0 %v1270_v30 }
  0x22   :  { %1275 = vmatprep.subr.bf16.mxu0 %v1274_v35 }
  0x24   :  { %1117 = vmatmul.mubr.msk.f32.gmra.mrb[8].mxu0 %vm73_vm0, %v29_v36 }
  0x25   :  { %1119 = vmatprep.mubr.msk.f32.mxu0 %vm73_vm0, %v30_v37  ;;  %1277 = vmatpush3.bf16.msra.mxu0 %v1274_v35 }
  0x26   :  { %1279 = vmatprep.subr.bf16.mxu0 %v1278_v3 }
  0x28   :  { %1120 = vmatmul.mubr.msk.f32.gmra.mrb[10].mxu0 %vm73_vm0, %v31_v38 }
  0x29   :  { %1122 = vmatprep.mubr.msk.f32.mxu0 %vm73_vm0, %v32_v39  ;;  %1281 = vmatpush3.bf16.msra.mxu0 %v1278_v3 }
  0x2c   :  { %1123 = vmatmul.mubr.msk.f32.gmra.mrb[12].mxu0 %vm73_vm0, %v33_v40 }
  0x2d   :  { %1125 = vmatprep.mubr.msk.f32.mxu0 %vm73_vm0, %v34_v41 }
  0x30   :  { %1126 = vmatmul.mubr.msk.f32.gmra.mrb[14].mxu0 %vm73_vm0, %v35_v42 }
  0x31   :  { %1128 = vmatprep.mubr.msk.f32.mxu0 %vm73_vm0, %v36_v43 }
  0x34   :  { %1129 = vmatmul.mubr.msk.f32.gmra.mrb[16].mxu0 %vm73_vm0, %v37_v44 }
  0x35   :  { %1131 = vmatprep.mubr.msk.f32.mxu0 %vm73_vm0, %v38_v45 }
  0x38   :  { %1132 = vmatmul.mubr.msk.f32.gmra.mrb[18].mxu0 %vm73_vm0, %v39_v46 }
  0x39   :  { %1134 = vmatprep.mubr.msk.f32.mxu0 %vm73_vm0, %v40_v47 }
  0x3c   :  { %1135 = vmatmul.mubr.msk.f32.gmra.mrb[20].mxu0 %vm73_vm0, %v41_v48 }
  0x3d   :  { %1137 = vmatprep.mubr.msk.f32.mxu0 %vm73_vm0, %v42_v49 }
  0x40   :  { %1138 = vmatmul.mubr.msk.f32.gmra.mrb[22].mxu0 %vm73_vm0, %v43_v50 }
  0x41   :  { %1140 = vmatprep.mubr.msk.f32.mxu0 %vm73_vm0, %v44_v51 }
  0x44   :  { %1141 = vmatmul.mubr.msk.f32.gmra.mrb[24].mxu0 %vm73_vm0, %v45_v52 }
  0x45   :  { %1143 = vmatprep.mubr.msk.f32.mxu0 %vm73_vm0, %v46_v53 }
  0x48   :  { %1144 = vmatmul.mubr.msk.f32.gmra.mrb[26].mxu0 %vm73_vm0, %v47_v54 }
  0x49   :  { %1146 = vmatprep.mubr.msk.f32.mxu0 %vm73_vm0, %v48_v55 }
  0x4c   :  { %1147 = vmatmul.mubr.msk.f32.gmra.mrb[28].mxu0 %vm73_vm0, %v49_v56 }
  0x4d   :  { %1149 = vmatprep.mubr.msk.f32.mxu0 %vm73_vm0, %v50_v57 }
  0x50   :  { %1150 = vmatmul.mubr.msk.f32.gmra.mrb[30].mxu0 %vm73_vm0, %v51_v58 }
  0x51   :  { %1152 = vmatprep.mubr.msk.f32.mxu0 %vm73_vm0, %v52_v59 }
  0x54   :  { %1153 = vmatmul.mubr.msk.f32.gmra.mrb[32].mxu0 %vm73_vm0, %v53_v60 }
  0x55   :  { %1155 = vmatprep.mubr.msk.f32.mxu0 %vm73_vm0, %v54_v61 }
  0x58   :  { %1156 = vmatmul.mubr.msk.f32.gmra.mrb[34].mxu0 %vm73_vm0, %v55_v62 }
  0x59   :  { %1158 = vmatprep.mubr.msk.f32.mxu0 %vm73_vm0, %v56_v63 }
  0x5c   :  { %1159 = vmatmul.mubr.msk.f32.gmra.mrb[36].mxu0 %vm73_vm0, %v57_v0 }
  0xe7   :  { %v1106_v5 = vpop.f32.mrb[0].mxu0 }
  0xe8   :  { %v260_v6 = vadd.f32 %v1106_v5, %v1539_v4  ;;  %v254_v7 = vpop.f32.mrb[1].mxu0 }
  0xe9   :  { %v255_v8 = vadd.f32 %v1539_v4, %v254_v7 }
  0xea   :  { %v444_v11 = vmax.f32 %v260_v6, 0.0 }
  0xeb   :  { %v443_v9 = vmax.f32 %v255_v8, 0.0  ;;  %v1109_v10 = vpop.f32.mrb[2].mxu0 }
  0xec   :  { %v270_v12 = vadd.f32 %v1109_v10, %v1539_v4  ;;  %v264_v13 = vpop.f32.mrb[3].mxu0 }
  0xed   :  { %v265_v14 = vadd.f32 %v1539_v4, %v264_v13  ;;  %1185 = vmatprep.mubr.msk.f32.mxu0 %vm500_vm1, %v443_v9 }
  0xee   :  { %1186 = vmatmul.mubr.msk.f32.vlgmr.msra.gmra.mrb[38].mxu0 %vm500_vm1, %v444_v11  ;;  %v446_v17 = vmax.f32 %v270_v12, 0.0 }
  0xef   :  { %v445_v15 = vmax.f32 %v265_v14, 0.0  ;;  %v1112_v16 = vpop.f32.mrb[4].mxu0 }
  0xf0   :  { %v280_v18 = vadd.f32 %v1112_v16, %v1539_v4  ;;  %v274_v19 = vpop.f32.mrb[5].mxu0 }
  0xf1   :  { %v275_v20 = vadd.f32 %v1539_v4, %v274_v19  ;;  %1188 = vmatprep.mubr.msk.f32.mxu1 %vm500_vm1, %v445_v15 }
  0xf2   :  { %1189 = vmatmul.mubr.msk.f32.vlgmr.msra.gmra.mrb[0].mxu1 %vm500_vm1, %v446_v17  ;;  %v448_v23 = vmax.f32 %v280_v18, 0.0 }
  0xf3   :  { %v447_v21 = vmax.f32 %v275_v20, 0.0  ;;  %v1115_v22 = vpop.f32.mrb[6].mxu0 }
  0xf4   :  { %v290_v24 = vadd.f32 %v1115_v22, %v1539_v4  ;;  %v284_v25 = vpop.f32.mrb[7].mxu0 }
  0xf5   :  { %v285_v26 = vadd.f32 %v1539_v4, %v284_v25  ;;  %1191 = vmatprep.mubr.msk.f32.mxu1 %vm500_vm1, %v447_v21 }
  0xf6   :  { %1192 = vmatmul.mubr.msk.f32.gmra.mrb[2].mxu1 %vm500_vm1, %v448_v23  ;;  %v450_v29 = vmax.f32 %v290_v24, 0.0 }
  0xf7   :  { %v449_v27 = vmax.f32 %v285_v26, 0.0  ;;  %v1118_v28 = vpop.f32.mrb[8].mxu0 }
  0xf8   :  { %v300_v30 = vadd.f32 %v1118_v28, %v1539_v4  ;;  %v294_v31 = vpop.f32.mrb[9].mxu0 }
  0xf9   :  { %v295_v32 = vadd.f32 %v1539_v4, %v294_v31  ;;  %1194 = vmatprep.mubr.msk.f32.mxu1 %vm500_vm1, %v449_v27 }
  0xfa   :  { %1195 = vmatmul.mubr.msk.f32.gmra.mrb[4].mxu1 %vm500_vm1, %v450_v29  ;;  %v452_v35 = vmax.f32 %v300_v30, 0.0 }
  0xfb   :  { %v451_v33 = vmax.f32 %v295_v32, 0.0  ;;  %v1121_v34 = vpop.f32.mrb[10].mxu0 }
  0xfc   :  { %v310_v36 = vadd.f32 %v1121_v34, %v1539_v4  ;;  %v304_v37 = vpop.f32.mrb[11].mxu0 }
  0xfd   :  { %v305_v38 = vadd.f32 %v1539_v4, %v304_v37  ;;  %1197 = vmatprep.mubr.msk.f32.mxu1 %vm500_vm1, %v451_v33 }
  0xfe   :  { %1198 = vmatmul.mubr.msk.f32.gmra.mrb[6].mxu1 %vm500_vm1, %v452_v35  ;;  %v454_v41 = vmax.f32 %v310_v36, 0.0 }
  0xff   :  { %v453_v39 = vmax.f32 %v305_v38, 0.0  ;;  %v1124_v40 = vpop.f32.mrb[12].mxu0 }
 0x100   :  { %v320_v42 = vadd.f32 %v1124_v40, %v1539_v4  ;;  %v314_v43 = vpop.f32.mrb[13].mxu0 }
 0x101   :  { %v315_v44 = vadd.f32 %v1539_v4, %v314_v43  ;;  %1200 = vmatprep.mubr.msk.f32.mxu1 %vm500_vm1, %v453_v39 }
 0x102   :  { %1201 = vmatmul.mubr.msk.f32.gmra.mrb[8].mxu1 %vm500_vm1, %v454_v41  ;;  %v456_v47 = vmax.f32 %v320_v42, 0.0 }
 0x103   :  { %v455_v45 = vmax.f32 %v315_v44, 0.0  ;;  %v1127_v46 = vpop.f32.mrb[14].mxu0 }
 0x104   :  { %v330_v48 = vadd.f32 %v1127_v46, %v1539_v4  ;;  %v324_v49 = vpop.f32.mrb[15].mxu0 }
 0x105   :  { %v325_v50 = vadd.f32 %v1539_v4, %v324_v49  ;;  %1203 = vmatprep.mubr.msk.f32.mxu1 %vm500_vm1, %v455_v45 }
 0x106   :  { %1204 = vmatmul.mubr.msk.f32.gmra.mrb[10].mxu1 %vm500_vm1, %v456_v47  ;;  %v458_v53 = vmax.f32 %v330_v48, 0.0 }
 0x107   :  { %v457_v51 = vmax.f32 %v325_v50, 0.0  ;;  %v1130_v52 = vpop.f32.mrb[16].mxu0 }
 0x108   :  { %v340_v54 = vadd.f32 %v1130_v52, %v1539_v4  ;;  %v334_v55 = vpop.f32.mrb[17].mxu0 }
 0x109   :  { %v335_v56 = vadd.f32 %v1539_v4, %v334_v55  ;;  %1206 = vmatprep.mubr.msk.f32.mxu1 %vm500_vm1, %v457_v51 }
 0x10a   :  { %1207 = vmatmul.mubr.msk.f32.gmra.mrb[12].mxu1 %vm500_vm1, %v458_v53  ;;  %v460_v59 = vmax.f32 %v340_v54, 0.0 }
 0x10b   :  { %v459_v57 = vmax.f32 %v335_v56, 0.0  ;;  %v1133_v58 = vpop.f32.mrb[18].mxu0  ;;  %v1620_v56 = vld [vmem:[%s1815_s4] ss:$0 sm:$0xff] }
 0x10c   :  { %v350_v60 = vadd.f32 %v1133_v58, %v1539_v4  ;;  %v344_v61 = vpop.f32.mrb[19].mxu0 }
 0x10d   :  { %v345_v62 = vadd.f32 %v1539_v4, %v344_v61  ;;  %1209 = vmatprep.mubr.msk.f32.mxu1 %vm500_vm1, %v459_v57 }
 0x10e   :  { %1210 = vmatmul.mubr.msk.f32.gmra.mrb[14].mxu1 %vm500_vm1, %v460_v59  ;;  %v462_v1 = vmax.f32 %v350_v60, 0.0 }
 0x10f   :  { %v461_v63 = vmax.f32 %v345_v62, 0.0  ;;  %v1136_v0 = vpop.f32.mrb[20].mxu0 }
 0x110   :  { %v360_v2 = vadd.f32 %v1136_v0, %v1539_v4  ;;  %v354_v3 = vpop.f32.mrb[21].mxu0 }
 0x111   :  { %v355_v5 = vadd.f32 %v1539_v4, %v354_v3  ;;  %1212 = vmatprep.mubr.msk.f32.mxu1 %vm500_vm1, %v461_v63 }
 0x112   :  { %1213 = vmatmul.mubr.msk.f32.gmra.mrb[16].mxu1 %vm500_vm1, %v462_v1  ;;  %v464_v8 = vmax.f32 %v360_v2, 0.0 }
 0x113   :  { %v463_v6 = vmax.f32 %v355_v5, 0.0  ;;  %v1139_v7 = vpop.f32.mrb[22].mxu0 }
 0x114   :  { %v370_v9 = vadd.f32 %v1139_v7, %v1539_v4  ;;  %v364_v10 = vpop.f32.mrb[23].mxu0 }
 0x115   :  { %v365_v11 = vadd.f32 %v1539_v4, %v364_v10  ;;  %1215 = vmatprep.mubr.msk.f32.mxu1 %vm500_vm1, %v463_v6 }
 0x116   :  { %1216 = vmatmul.mubr.msk.f32.gmra.mrb[18].mxu1 %vm500_vm1, %v464_v8  ;;  %v466_v14 = vmax.f32 %v370_v9, 0.0 }
 0x117   :  { %v465_v12 = vmax.f32 %v365_v11, 0.0  ;;  %v1142_v13 = vpop.f32.mrb[24].mxu0 }
 0x118   :  { %v380_v15 = vadd.f32 %v1142_v13, %v1539_v4  ;;  %v374_v16 = vpop.f32.mrb[25].mxu0 }
 0x119   :  { %v375_v17 = vadd.f32 %v1539_v4, %v374_v16  ;;  %1218 = vmatprep.mubr.msk.f32.mxu1 %vm500_vm1, %v465_v12 }
 0x11a   :  { %1219 = vmatmul.mubr.msk.f32.gmra.mrb[20].mxu1 %vm500_vm1, %v466_v14  ;;  %v468_v20 = vmax.f32 %v380_v15, 0.0 }
 0x11b   :  { %v467_v18 = vmax.f32 %v375_v17, 0.0  ;;  %v1145_v19 = vpop.f32.mrb[26].mxu0 }
 0x11c   :  { %v390_v21 = vadd.f32 %v1145_v19, %v1539_v4  ;;  %v384_v22 = vpop.f32.mrb[27].mxu0 }
 0x11d   :  { %v385_v23 = vadd.f32 %v1539_v4, %v384_v22  ;;  %1221 = vmatprep.mubr.msk.f32.mxu1 %vm500_vm1, %v467_v18 }
 0x11e   :  { %1222 = vmatmul.mubr.msk.f32.gmra.mrb[22].mxu1 %vm500_vm1, %v468_v20  ;;  %v470_v26 = vmax.f32 %v390_v21, 0.0 }
 0x11f   :  { %v469_v24 = vmax.f32 %v385_v23, 0.0  ;;  %v1148_v25 = vpop.f32.mrb[28].mxu0 }
 0x120   :  { %v400_v27 = vadd.f32 %v1148_v25, %v1539_v4  ;;  %v394_v28 = vpop.f32.mrb[29].mxu0 }
 0x121   :  { %v395_v29 = vadd.f32 %v1539_v4, %v394_v28  ;;  %1224 = vmatprep.mubr.msk.f32.mxu1 %vm500_vm1, %v469_v24 }
 0x122   :  { %1225 = vmatmul.mubr.msk.f32.gmra.mrb[24].mxu1 %vm500_vm1, %v470_v26  ;;  %v472_v32 = vmax.f32 %v400_v27, 0.0 }
 0x123   :  { %v471_v30 = vmax.f32 %v395_v29, 0.0  ;;  %v1151_v31 = vpop.f32.mrb[30].mxu0 }
 0x124   :  { %v410_v33 = vadd.f32 %v1151_v31, %v1539_v4  ;;  %v404_v34 = vpop.f32.mrb[31].mxu0 }
 0x125   :  { %v405_v35 = vadd.f32 %v1539_v4, %v404_v34  ;;  %1227 = vmatprep.mubr.msk.f32.mxu1 %vm500_vm1, %v471_v30 }
 0x126   :  { %1228 = vmatmul.mubr.msk.f32.gmra.mrb[26].mxu1 %vm500_vm1, %v472_v32  ;;  %v474_v38 = vmax.f32 %v410_v33, 0.0 }
 0x127   :  { %v473_v36 = vmax.f32 %v405_v35, 0.0  ;;  %v1154_v37 = vpop.f32.mrb[32].mxu0 }
 0x128   :  { %v420_v39 = vadd.f32 %v1154_v37, %v1539_v4  ;;  %v414_v40 = vpop.f32.mrb[33].mxu0 }
 0x129   :  { %v415_v41 = vadd.f32 %v1539_v4, %v414_v40  ;;  %1230 = vmatprep.mubr.msk.f32.mxu1 %vm500_vm1, %v473_v36 }
 0x12a   :  { %1231 = vmatmul.mubr.msk.f32.gmra.mrb[28].mxu1 %vm500_vm1, %v474_v38  ;;  %v476_v44 = vmax.f32 %v420_v39, 0.0 }
 0x12b   :  { %v475_v42 = vmax.f32 %v415_v41, 0.0  ;;  %v1157_v43 = vpop.f32.mrb[34].mxu0 }
 0x12c   :  { %v430_v45 = vadd.f32 %v1157_v43, %v1539_v4  ;;  %v424_v46 = vpop.f32.mrb[35].mxu0 }
 0x12d   :  { %v425_v47 = vadd.f32 %v1539_v4, %v424_v46  ;;  %1233 = vmatprep.mubr.msk.f32.mxu1 %vm500_vm1, %v475_v42 }
 0x12e   :  { %1234 = vmatmul.mubr.msk.f32.gmra.mrb[30].mxu1 %vm500_vm1, %v476_v44  ;;  %v478_v50 = vmax.f32 %v430_v45, 0.0 }
 0x12f   :  { %v477_v48 = vmax.f32 %v425_v47, 0.0  ;;  %v1160_v49 = vpop.f32.mrb[36].mxu0 }
 0x130   :  { %v440_v51 = vadd.f32 %v1160_v49, %v1539_v4  ;;  %v434_v52 = vpop.f32.mrb[37].mxu0 }
 0x131   :  { %v435_v53 = vadd.f32 %v1539_v4, %v434_v52  ;;  %1236 = vmatprep.mubr.msk.f32.mxu1 %vm500_vm1, %v477_v48 }
 0x132   :  { %1237 = vmatmul.mubr.msk.f32.gmra.mrb[32].mxu1 %vm500_vm1, %v478_v50  ;;  %v480_v55 = vmax.f32 %v440_v51, 0.0 }
 0x133   :  { %v479_v54 = vmax.f32 %v435_v53, 0.0 }
 0x135   :  { %1239 = vmatprep.mubr.msk.f32.mxu1 %vm500_vm1, %v479_v54 }
 0x136   :  { %1240 = vmatmul.mubr.msk.f32.gmra.mrb[34].mxu1 %vm500_vm1, %v480_v55 }
 0x1c1   :  { %v1187_v57 = vpop.f32.mrb[38].mxu0 }
 0x1c2   :  { %v687_v58 = vadd.f32 %v1187_v57, %v1620_v56  ;;  %v681_v4 = vpop.f32.mrb[39].mxu0 }
 0x1c3   :  { %v682_v59 = vadd.f32 %v1620_v56, %v681_v4 }
 0x1c4   :  { %872 = vst.msk [vmem:[%s1816_s5 + $0x8] sm:$0xff] %vm870_vm2, %v687_v58 }
 0x1c5   :  { %871 = vst.msk [vmem:[%s1816_s5] sm:$0xff] %vm870_vm2, %v682_v59  ;;  %v1190_v60 = vpop.f32.mrb[0].mxu1 }
 0x1c6   :  { %v697_v61 = vadd.f32 %v1190_v60, %v1620_v56  ;;  %v691_v62 = vpop.f32.mrb[1].mxu1 }
 0x1c7   :  { %v692_v63 = vadd.f32 %v1620_v56, %v691_v62 }
 0x1c8   :  { %874 = vst.msk [vmem:[%s1816_s5 + $0x18] sm:$0xff] %vm870_vm2, %v697_v61 }
 0x1c9   :  { %873 = vst.msk [vmem:[%s1816_s5 + $0x10] sm:$0xff] %vm870_vm2, %v692_v63  ;;  %v1193_v0 = vpop.f32.mrb[2].mxu1 }
 0x1ca   :  { %v707_v1 = vadd.f32 %v1193_v0, %v1620_v56  ;;  %v701_v2 = vpop.f32.mrb[3].mxu1 }
 0x1cb   :  { %v702_v3 = vadd.f32 %v1620_v56, %v701_v2 }
 0x1cc   :  { %876 = vst.msk [vmem:[%s1816_s5 + $0x28] sm:$0xff] %vm870_vm2, %v707_v1 }
 0x1cd   :  { %875 = vst.msk [vmem:[%s1816_s5 + $0x20] sm:$0xff] %vm870_vm2, %v702_v3  ;;  %v1196_v5 = vpop.f32.mrb[4].mxu1 }
 0x1ce   :  { %v717_v6 = vadd.f32 %v1196_v5, %v1620_v56  ;;  %v711_v7 = vpop.f32.mrb[5].mxu1 }
 0x1cf   :  { %v712_v8 = vadd.f32 %v1620_v56, %v711_v7 }
 0x1d0   :  { %878 = vst.msk [vmem:[%s1816_s5 + $0x38] sm:$0xff] %vm870_vm2, %v717_v6 }
 0x1d1   :  { %877 = vst.msk [vmem:[%s1816_s5 + $0x30] sm:$0xff] %vm870_vm2, %v712_v8  ;;  %v1199_v9 = vpop.f32.mrb[6].mxu1 }
 0x1d2   :  { %v727_v10 = vadd.f32 %v1199_v9, %v1620_v56  ;;  %v721_v11 = vpop.f32.mrb[7].mxu1 }
 0x1d3   :  { %v722_v12 = vadd.f32 %v1620_v56, %v721_v11 }
 0x1d4   :  { %880 = vst.msk [vmem:[%s1816_s5 + $0x48] sm:$0xff] %vm870_vm2, %v727_v10 }
 0x1d5   :  { %879 = vst.msk [vmem:[%s1816_s5 + $0x40] sm:$0xff] %vm870_vm2, %v722_v12  ;;  %v1202_v13 = vpop.f32.mrb[8].mxu1 }
 0x1d6   :  { %v737_v14 = vadd.f32 %v1202_v13, %v1620_v56  ;;  %v731_v15 = vpop.f32.mrb[9].mxu1 }
 0x1d7   :  { %v732_v16 = vadd.f32 %v1620_v56, %v731_v15 }
 0x1d8   :  { %882 = vst.msk [vmem:[%s1816_s5 + $0x58] sm:$0xff] %vm870_vm2, %v737_v14 }
 0x1d9   :  { %881 = vst.msk [vmem:[%s1816_s5 + $0x50] sm:$0xff] %vm870_vm2, %v732_v16  ;;  %v1205_v17 = vpop.f32.mrb[10].mxu1 }
 0x1da   :  { %v747_v18 = vadd.f32 %v1205_v17, %v1620_v56  ;;  %v741_v19 = vpop.f32.mrb[11].mxu1 }
 0x1db   :  { %v742_v20 = vadd.f32 %v1620_v56, %v741_v19 }
 0x1dc   :  { %884 = vst.msk [vmem:[%s1816_s5 + $0x68] sm:$0xff] %vm870_vm2, %v747_v18 }
 0x1dd   :  { %883 = vst.msk [vmem:[%s1816_s5 + $0x60] sm:$0xff] %vm870_vm2, %v742_v20  ;;  %v1208_v21 = vpop.f32.mrb[12].mxu1 }
 0x1de   :  { %v757_v22 = vadd.f32 %v1208_v21, %v1620_v56  ;;  %v751_v23 = vpop.f32.mrb[13].mxu1 }
 0x1df   :  { %v752_v24 = vadd.f32 %v1620_v56, %v751_v23 }
 0x1e0   :  { %886 = vst.msk [vmem:[%s1816_s5 + $0x78] sm:$0xff] %vm870_vm2, %v757_v22 }
 0x1e1   :  { %885 = vst.msk [vmem:[%s1816_s5 + $0x70] sm:$0xff] %vm870_vm2, %v752_v24  ;;  %v1211_v25 = vpop.f32.mrb[14].mxu1 }
 0x1e2   :  { %v767_v26 = vadd.f32 %v1211_v25, %v1620_v56  ;;  %v761_v27 = vpop.f32.mrb[15].mxu1 }
 0x1e3   :  { %v762_v28 = vadd.f32 %v1620_v56, %v761_v27 }
 0x1e4   :  { %888 = vst.msk [vmem:[%s1816_s5 + $0x88] sm:$0xff] %vm870_vm2, %v767_v26 }
 0x1e5   :  { %887 = vst.msk [vmem:[%s1816_s5 + $0x80] sm:$0xff] %vm870_vm2, %v762_v28  ;;  %v1214_v29 = vpop.f32.mrb[16].mxu1 }
 0x1e6   :  { %v777_v30 = vadd.f32 %v1214_v29, %v1620_v56  ;;  %v771_v31 = vpop.f32.mrb[17].mxu1 }
 0x1e7   :  { %v772_v32 = vadd.f32 %v1620_v56, %v771_v31 }
 0x1e8   :  { %890 = vst.msk [vmem:[%s1816_s5 + $0x98] sm:$0xff] %vm870_vm2, %v777_v30 }
 0x1e9   :  { %889 = vst.msk [vmem:[%s1816_s5 + $0x90] sm:$0xff] %vm870_vm2, %v772_v32  ;;  %v1217_v33 = vpop.f32.mrb[18].mxu1 }
 0x1ea   :  { %v787_v34 = vadd.f32 %v1217_v33, %v1620_v56  ;;  %v781_v35 = vpop.f32.mrb[19].mxu1 }
 0x1eb   :  { %v782_v36 = vadd.f32 %v1620_v56, %v781_v35 }
 0x1ec   :  { %892 = vst.msk [vmem:[%s1816_s5 + $0xa8] sm:$0xff] %vm870_vm2, %v787_v34 }
 0x1ed   :  { %891 = vst.msk [vmem:[%s1816_s5 + $0xa0] sm:$0xff] %vm870_vm2, %v782_v36  ;;  %v1220_v37 = vpop.f32.mrb[20].mxu1 }
 0x1ee   :  { %v797_v38 = vadd.f32 %v1220_v37, %v1620_v56  ;;  %v791_v39 = vpop.f32.mrb[21].mxu1 }
 0x1ef   :  { %v792_v40 = vadd.f32 %v1620_v56, %v791_v39 }
 0x1f0   :  { %894 = vst.msk [vmem:[%s1816_s5 + $0xb8] sm:$0xff] %vm870_vm2, %v797_v38 }
 0x1f1   :  { %893 = vst.msk [vmem:[%s1816_s5 + $0xb0] sm:$0xff] %vm870_vm2, %v792_v40  ;;  %v1223_v41 = vpop.f32.mrb[22].mxu1 }
 0x1f2   :  { %v807_v42 = vadd.f32 %v1223_v41, %v1620_v56  ;;  %v801_v43 = vpop.f32.mrb[23].mxu1 }
 0x1f3   :  { %v802_v44 = vadd.f32 %v1620_v56, %v801_v43 }
 0x1f4   :  { %896 = vst.msk [vmem:[%s1816_s5 + $0xc8] sm:$0xff] %vm870_vm2, %v807_v42 }
 0x1f5   :  { %895 = vst.msk [vmem:[%s1816_s5 + $0xc0] sm:$0xff] %vm870_vm2, %v802_v44  ;;  %v1226_v45 = vpop.f32.mrb[24].mxu1 }
 0x1f6   :  { %v817_v46 = vadd.f32 %v1226_v45, %v1620_v56  ;;  %v811_v47 = vpop.f32.mrb[25].mxu1 }
 0x1f7   :  { %v812_v48 = vadd.f32 %v1620_v56, %v811_v47 }
 0x1f8   :  { %898 = vst.msk [vmem:[%s1816_s5 + $0xd8] sm:$0xff] %vm870_vm2, %v817_v46 }
 0x1f9   :  { %897 = vst.msk [vmem:[%s1816_s5 + $0xd0] sm:$0xff] %vm870_vm2, %v812_v48  ;;  %v1229_v49 = vpop.f32.mrb[26].mxu1 }
 0x1fa   :  { %v827_v50 = vadd.f32 %v1229_v49, %v1620_v56  ;;  %v821_v51 = vpop.f32.mrb[27].mxu1 }
 0x1fb   :  { %v822_v52 = vadd.f32 %v1620_v56, %v821_v51 }
 0x1fc   :  { %900 = vst.msk [vmem:[%s1816_s5 + $0xe8] sm:$0xff] %vm870_vm2, %v827_v50 }
 0x1fd   :  { %899 = vst.msk [vmem:[%s1816_s5 + $0xe0] sm:$0xff] %vm870_vm2, %v822_v52  ;;  %v1232_v53 = vpop.f32.mrb[28].mxu1 }
 0x1fe   :  { %v837_v54 = vadd.f32 %v1232_v53, %v1620_v56  ;;  %v831_v55 = vpop.f32.mrb[29].mxu1 }
 0x1ff   :  { %v832_v57 = vadd.f32 %v1620_v56, %v831_v55 }
 0x200   :  { %902 = vst.msk [vmem:[%s1816_s5 + $0xf8] sm:$0xff] %vm870_vm2, %v837_v54 }
 0x201   :  { %901 = vst.msk [vmem:[%s1816_s5 + $0xf0] sm:$0xff] %vm870_vm2, %v832_v57  ;;  %v1235_v58 = vpop.f32.mrb[30].mxu1 }
 0x202   :  { %v847_v4 = vadd.f32 %v1235_v58, %v1620_v56  ;;  %v841_v59 = vpop.f32.mrb[31].mxu1 }
 0x203   :  { %v842_v60 = vadd.f32 %v1620_v56, %v841_v59 }
 0x204   :  { %904 = vst.msk [vmem:[%s1816_s5 + $0x108] sm:$0xff] %vm870_vm2, %v847_v4 }
 0x205   :  { %903 = vst.msk [vmem:[%s1816_s5 + $0x100] sm:$0xff] %vm870_vm2, %v842_v60  ;;  %v1238_v61 = vpop.f32.mrb[32].mxu1 }
 0x206   :  { %v857_v62 = vadd.f32 %v1238_v61, %v1620_v56  ;;  %v851_v63 = vpop.f32.mrb[33].mxu1 }
 0x207   :  { %v852_v0 = vadd.f32 %v1620_v56, %v851_v63 }
 0x208   :  { %906 = vst.msk [vmem:[%s1816_s5 + $0x118] sm:$0xff] %vm870_vm2, %v857_v62 }
 0x209   :  { %905 = vst.msk [vmem:[%s1816_s5 + $0x110] sm:$0xff] %vm870_vm2, %v852_v0  ;;  %v1241_v1 = vpop.f32.mrb[34].mxu1 }
 0x20a   :  { %v867_v2 = vadd.f32 %v1241_v1, %v1620_v56  ;;  %v861_v3 = vpop.f32.mrb[35].mxu1 }
 0x20b   :  { %v862_v5 = vadd.f32 %v1620_v56, %v861_v3 }
 0x20c   :  { %909 = vst.msk [vmem:[%s1816_s5 + $0x128] sm:$0xf] %vm908_vm3, %v867_v2 }
 0x20d   :  { %907 = vst.msk [vmem:[%s1816_s5 + $0x120] sm:$0xff] %vm870_vm2, %v862_v5 }

</bundles_post_ra>
